<compile_context>
chip_gen: v7x
topology: tpu7x:2x2x1
jax: 0.10.0
libtpu: 0.0.40
codegen_flags: <defaults>
</compile_context>

<pallas_src>
import numpy as np
import jax
import jax.numpy as jnp
from jax.experimental import pallas as pl
from jax.experimental.pallas import tpu as pltpu


# ----------------------------------------------------------------------------
# PyTorch-exact bicubic interpolation matrices (a = -0.75, align_corners=False,
# border clamping).  Plain numpy, built once per shape.
# ----------------------------------------------------------------------------
def _cubic_coeffs(t, A=-0.75):
    def conv1(x):  # |x| <= 1
        return ((A + 2.0) * x - (A + 3.0)) * x * x + 1.0

    def conv2(x):  # 1 < |x| < 2
        return ((A * x - 5.0 * A) * x + 8.0 * A) * x - 4.0 * A

    return np.stack(
        [conv2(t + 1.0), conv1(t), conv1(1.0 - t), conv2(2.0 - t)], axis=-1
    )  # (out, 4)


def make_bicubic_matrix(in_size, out_size):
    dst = np.arange(out_size, dtype=np.float64)
    real = (dst + 0.5) * (in_size / out_size) - 0.5  # align_corners=False
    idx = np.floor(real).astype(np.int64)
    t = real - idx
    coeffs = _cubic_coeffs(t)  # (out_size, 4)
    M = np.zeros((out_size, in_size), dtype=np.float64)
    rows = dst.astype(np.int64)
    for k in range(4):
        cols = np.clip(idx - 1 + k, 0, in_size - 1)
        np.add.at(M, (rows, cols), coeffs[:, k])
    return M.astype(np.float32)


# ----------------------------------------------------------------------------
# Generation-aware hardware parameters
# ----------------------------------------------------------------------------
def _tpu_params():
    """Returns (vmem_capacity_bytes, mxu_contraction_dim, two_tensorcores)."""
    vmem_cap = None
    try:
        vmem_cap = int(getattr(pltpu.get_tpu_info(), "vmem_capacity_bytes"))
    except Exception:
        vmem_cap = None
    kind = ""
    try:
        kind = jax.devices()[0].device_kind.lower()
    except Exception:
        pass

    if ("v5 lite" in kind) or ("v5e" in kind) or ("v5lite" in kind):
        mxu_k, default_cap, two_tc = 128, 128 << 20, False      # v5e
    elif "v6" in kind:
        mxu_k, default_cap, two_tc = 256, 128 << 20, False      # v6e
    elif "7" in kind:
        mxu_k, default_cap, two_tc = 256, 64 << 20, True        # v7x (2 TCs)
    else:
        mxu_k, default_cap, two_tc = 128, 64 << 20, False       # conservative

    if vmem_cap is None:
        vmem_cap = default_cap
    return vmem_cap, mxu_k, two_tc


# ----------------------------------------------------------------------------
# Tiling / channel-batch selection
# ----------------------------------------------------------------------------
def _fold_group(bc, h, mxu_k):
    """Largest divisor g of bc with g*h <= max(h, mxu_k); bounds the unroll."""
    divs = [d for d in range(1, bc + 1) if bc % d == 0]
    gmax = max(1, mxu_k // h)
    g = max(d for d in divs if d <= gmax)
    while bc // g > 32:                       # keep the static unroll bounded
        g = min(d for d in divs if d > g)
    return g


def _vmem_estimate(bc, tw, H, W, Ho, Wo, g, w_first, itemsize=4):
    x_blk = bc * H * W                        # double-buffered input block
    o_blk = bc * Ho * tw                      # double-buffered output block
    a_blk = (g * Ho) * (g * H)                # constant (still charged 2x, see TODO)
    bt_blk = W * tw                           # constant (still charged 2x, see TODO)
    scratch = bc * H * tw if w_first else bc * Ho * W
    return itemsize * (2 * (x_blk + o_blk + a_blk + bt_blk) + scratch)


def _choose_config(NC, H, W, Ho, Wo, *, budget, mxu_k, prefer_steps, prefer_even,
                   w_first):
    """Pick (BC, tile_Wo, G, vmem_estimate)."""
    # Wo tile options: full Wo, plus lane-aligned (multiple-of-128) divisors.
    tw_opts = {Wo}
    if w_first:
        for tw in range(128, Wo, 128):
            if Wo % tw == 0:
                tw_opts.add(tw)
    # TODO(synk): Wo / Ho-band tiling for the H-first order as well.

    # Channel-batch options satisfying the (8, 128) block-layout rule.
    bc_opts = [bc for bc in range(1, NC + 1)
               if NC % bc == 0
               and ((bc * H) % 8 == 0 or bc == NC)
               and ((bc * Ho) % 8 == 0 or bc == NC)]

    cfgs = []
    for tw in sorted(tw_opts, reverse=True):
        for bc in bc_opts:
            g = _fold_group(bc, H, mxu_k)
            est = _vmem_estimate(bc, tw, H, W, Ho, Wo, g, w_first)
            steps = (NC // bc) * (Wo // tw)
            cfgs.append((bc, tw, g, est, steps))

    feasible = [c for c in cfgs if c[3] <= budget]
    if not feasible:
        # No silent budget bypass: best effort = minimum-footprint config.
        # TODO(synk): banded Ho tiling so 1080p/4K inputs always fit v7x VMEM.
        bc, tw, g, est, _ = min(cfgs, key=lambda c: c[3])
        return bc, tw, g, est

    def _pref(c):
        steps = c[4]
        return steps >= prefer_steps and (not prefer_even or steps % 2 == 0)

    pool = [c for c in feasible if _pref(c)] or feasible
    bc, tw, g, est, _ = max(pool, key=lambda c: (c[0] * c[1], c[0]))
    return bc, tw, g, est


# ----------------------------------------------------------------------------
# Kernel
#   W-first: t = (BC*H, W) @ (W, tWo);  out groups = A_blk (G*Ho, G*H) @ t-groups
#   H-first: t-groups = A_blk @ x-groups; out = (BC*Ho, W) @ (W, Wo)
# ----------------------------------------------------------------------------
def _make_bicubic_kernel(bc, g, h_in, h_out, w_first):
    n_groups = bc // g
    ghi = g * h_in
    gho = g * h_out

    def kernel(x_ref, ablk_ref, bt_ref, o_ref, t_ref):
        ablk = ablk_ref[...]                       # hoisted out of the group loop
        if w_first:
            # Pass 1 (W-direction), folded over all bc slabs — one MXU matmul.
            t_ref[...] = jnp.dot(
                x_ref[...], bt_ref[...], preferred_element_type=jnp.float32)
            # Pass 2 (H-direction), block-diagonal A over groups of g slabs.
            for q in range(n_groups):
                o_ref[pl.ds(q * gho, gho), :] = jnp.dot(
                    ablk, t_ref[pl.ds(q * ghi, ghi), :],
                    preferred_element_type=jnp.float32,
                ).astype(o_ref.dtype)
        else:
            # Pass 1 (H-direction), block-diagonal A over groups of g slabs.
            for q in range(n_groups):
                t_ref[pl.ds(q * gho, gho), :] = jnp.dot(
                    ablk, x_ref[pl.ds(q * ghi, ghi), :],
                    preferred_element_type=jnp.float32)
            # Pass 2 (W-direction), folded over all bc slabs — one MXU matmul.
            o_ref[...] = jnp.dot(
                t_ref[...], bt_ref[...], preferred_element_type=jnp.float32
            ).astype(o_ref.dtype)

    return kernel


# ----------------------------------------------------------------------------
# Wrapper
# ----------------------------------------------------------------------------
def bicubic_upsample(x, r):
    """x: (N, C, H, W) float32, r: integer scale factor. Returns (N, C, H*r, W*r)."""
    N, C, H, W = x.shape
    Ho, Wo = H * r, W * r
    NC = N * C

    # Pass order (fixed): W-pass first when W >= H (cost ∝ W + r*H),
    # H-pass first when H > W (cost ∝ H + r*W).
    w_first = W >= H

    A = make_bicubic_matrix(H, Ho)          # (Ho, H)
    Bt = make_bicubic_matrix(W, Wo).T       # (W, Wo)

    vmem_cap, mxu_k, two_tc = _tpu_params()
    budget = int(0.62 * vmem_cap)           # ≈80 MiB on v5e/v6e, ≈40 MiB on v7x
    prefer_steps = 4 if two_tc else 2       # v7x: >=4 and even (2 TCs pipelined)

    BC, tile_wo, G, est = _choose_config(
        NC, H, W, Ho, Wo, budget=budget, mxu_k=mxu_k,
        prefer_steps=prefer_steps, prefer_even=two_tc, w_first=w_first)

    # Block-diagonal H-pass matrix: fills the MXU contraction to ~mxu_k.
    A_blk = jnp.asarray(np.kron(np.eye(G, dtype=np.float32), A))   # (G*Ho, G*H)
    Bt_dev = jnp.asarray(Bt)                                       # (W, Wo)

    grid = (NC // BC, Wo // tile_wo)
    scratch_shape = (BC * H, tile_wo) if w_first else (BC * Ho, W)
    vmem_limit = int(min(0.9 * vmem_cap, max(32 << 20, 1.35 * est)))

    # Flat contiguity-preserving views: per grid step the kernel sees a fully
    # contiguous (BC*H, W) input slab and a (BC*Ho, tile_Wo) output slab.
    x2d = x.reshape(NC * H, W)

    if w_first:
        flops = 2 * NC * (H * W * Wo + Ho * H * Wo)
    else:
        flops = 2 * NC * (Ho * H * W + Ho * W * Wo)
    bytes_accessed = 4 * (NC * H * W + NC * Ho * Wo + int(A_blk.size) + W * Wo)

    out2d = pl.pallas_call(
        _make_bicubic_kernel(BC, G, H, Ho, w_first),
        out_shape=jax.ShapeDtypeStruct((NC * Ho, Wo), x.dtype),
        grid_spec=pltpu.PrefetchScalarGridSpec(
            num_scalar_prefetch=0,
            grid=grid,
            in_specs=[
                pl.BlockSpec((BC * H, W), lambda i, j: (i, 0)),       # x slab
                pl.BlockSpec((G * Ho, G * H), lambda i, j: (0, 0)),   # A_blk (resident)
                pl.BlockSpec((W, tile_wo), lambda i, j: (0, j)),      # B^T tile
            ],
            # When Wo is tiled, tile_wo is a multiple of 128 → unmasked lane-dense
            # stores; untiled production shapes have Wo >= 128 (lane-dense too).
            out_specs=pl.BlockSpec((BC * Ho, tile_wo), lambda i, j: (i, j)),
            scratch_shapes=[pltpu.VMEM(scratch_shape, jnp.float32)],
        ),
        compiler_params=pltpu.CompilerParams(
            dimension_semantics=("parallel", "parallel"),
            vmem_limit_bytes=vmem_limit,
        ),
        cost_estimate=pl.CostEstimate(
            flops=flops, transcendentals=0, bytes_accessed=bytes_accessed),
    )(x2d, A_blk, Bt_dev)

    return out2d.reshape(N, C, Ho, Wo)


class BicubicPallas:
    """Mirrors SRExp Bicubic module: holds an (unused-in-forward) scalar weight."""

    def __init__(self, scale):
        self.r = scale
        # nn.Parameter(torch.randn(1)) — exists but does not affect the forward.
        self.weights = jax.random.normal(jax.random.PRNGKey(42), (1,), jnp.float32)

    def __call__(self, x):
        w = self.weights  # noqa: F841  (parameter exists but is unused, as in the spec)
        return bicubic_upsample(x, self.r)


# ----------------------------------------------------------------------------
# Numpy reference (same separable matrices) for a sanity check.
# ----------------------------------------------------------------------------
def _reference(x, r):
    N, C, H, W = x.shape
    A = make_bicubic_matrix(H, H * r)
    B = make_bicubic_matrix(W, W * r)
    return np.einsum("oh,nchw,pw->ncop", A, np.asarray(x), B).astype(np.float32)


if __name__ == "__main__":
    key = jax.random.PRNGKey(0)
    N, C, H, W = 2, 4, 16, 16
    r = 2
    x = jax.random.normal(key, (N, C, H, W), dtype=jnp.float32)

    model = BicubicPallas(scale=r)
    out = jax.block_until_ready(model(x))
    assert out.shape == (N, C, H * r, W * r), out.shape
    ref = _reference(np.asarray(x), r)
    np.testing.assert_allclose(np.asarray(out), ref, rtol=1e-5, atol=1e-5)

    # Also exercise the H-first pass order (H > W).
    x2 = jax.random.normal(jax.random.PRNGKey(1), (1, 3, 24, 16), dtype=jnp.float32)
    out2 = jax.block_until_ready(bicubic_upsample(x2, 2))
    ref2 = _reference(np.asarray(x2), 2)
    assert out2.shape == (1, 3, 48, 32), out2.shape
    np.testing.assert_allclose(np.asarray(out2), ref2, rtol=1e-5, atol=1e-5)

    print("KERNEL_OK")
</pallas_src>

<mosaic_0001>
module attributes {stable_mosaic.version = 11 : i64} {
  func.func @kernel(%arg0: i32, %arg1: i32, %arg2: memref<64x16xf32, #tpu.memory_space<vmem>>, %arg3: memref<128x64xf32, #tpu.memory_space<vmem>>, %arg4: memref<16x32xf32, #tpu.memory_space<vmem>>, %arg5: memref<128x32xf32, #tpu.memory_space<vmem>>, %arg6: memref<64x32xf32, #tpu.memory_space<vmem>>) attributes {dimension_semantics = [#tpu.dimension_semantics<parallel>, #tpu.dimension_semantics<parallel>], iteration_bounds = array<i64: 2, 1>, scalar_prefetch = 0 : i64, scratch_operands = 1 : i64, tpu.core_type = #tpu.core_type<tc>, window_params = [{transform_indices = @transform_0, window_bounds = array<i64: 64, 16>}, {pipeline_mode = #tpu.pipeline_mode<synchronous>, transform_indices = @transform_1, window_bounds = array<i64: 128, 64>}, {transform_indices = @transform_2, window_bounds = array<i64: 16, 32>}, {transform_indices = @transform_3, window_bounds = array<i64: 128, 32>}]} {
    %c0 = arith.constant 0 : index
    %c0_0 = arith.constant 0 : index
    %0 = vector.load %arg3[%c0, %c0_0] : memref<128x64xf32, #tpu.memory_space<vmem>>, vector<128x64xf32>
    %c0_1 = arith.constant 0 : index
    %c0_2 = arith.constant 0 : index
    %1 = vector.load %arg2[%c0_1, %c0_2] : memref<64x16xf32, #tpu.memory_space<vmem>>, vector<64x16xf32>
    %c0_3 = arith.constant 0 : index
    %c0_4 = arith.constant 0 : index
    %2 = vector.load %arg4[%c0_3, %c0_4] : memref<16x32xf32, #tpu.memory_space<vmem>>, vector<16x32xf32>
    %cst = arith.constant dense<0.000000e+00> : vector<64x32xf32>
    %3 = tpu.matmul %1, %2, %cst {dimension_numbers = #tpu.dot_dimension_numbers<[1], [0], [0], [1], [0, 0, 1, 1], [], []>} : vector<64x16xf32>, vector<16x32xf32>, vector<64x32xf32> -> vector<64x32xf32>
    %c0_5 = arith.constant 0 : index
    %c0_6 = arith.constant 0 : index
    %4 = vector.load %arg6[%c0_5, %c0_6] : memref<64x32xf32, #tpu.memory_space<vmem>>, vector<64x32xf32>
    tpu.vector_store %arg6[%c0_5, %c0_6], %3 {strides = array<i32>} : memref<64x32xf32, #tpu.memory_space<vmem>>, vector<64x32xf32>,
    %c0_7 = arith.constant 0 : index
    %c0_8 = arith.constant 0 : index
    %5 = vector.load %arg6[%c0_7, %c0_8] : memref<64x32xf32, #tpu.memory_space<vmem>>, vector<64x32xf32>
    %cst_9 = arith.constant dense<0.000000e+00> : vector<128x32xf32>
    %6 = tpu.matmul %0, %5, %cst_9 {dimension_numbers = #tpu.dot_dimension_numbers<[1], [0], [0], [1], [0, 0, 1, 1], [], []>} : vector<128x64xf32>, vector<64x32xf32>, vector<128x32xf32> -> vector<128x32xf32>
    %c0_10 = arith.constant 0 : index
    %c0_11 = arith.constant 0 : index
    %7 = vector.load %arg5[%c0_10, %c0_11] : memref<128x32xf32, #tpu.memory_space<vmem>>, vector<128x32xf32>
    tpu.vector_store %arg5[%c0_10, %c0_11], %6 {strides = array<i32>} : memref<128x32xf32, #tpu.memory_space<vmem>>, vector<128x32xf32>,
    return
  }
  func.func @transform_0(%arg0: i32, %arg1: i32) -> (i32, i32) {
    %c0_i32 = arith.constant 0 : i32
    %c0_i32_0 = arith.constant 0 : i32
    return %arg0, %c0_i32 : i32, i32
  }
  func.func @transform_1(%arg0: i32, %arg1: i32) -> (i32, i32) {
    %c0_i32 = arith.constant 0 : i32
    %c0_i32_0 = arith.constant 0 : i32
    %c0_i32_1 = arith.constant 0 : i32
    return %c0_i32, %c0_i32_0 : i32, i32
  }
  func.func @transform_2(%arg0: i32, %arg1: i32) -> (i32, i32) {
    %c0_i32 = arith.constant 0 : i32
    %c0_i32_0 = arith.constant 0 : i32
    return %c0_i32, %arg1 : i32, i32
  }
  func.func @transform_3(%arg0: i32, %arg1: i32) -> (i32, i32) {
    %c0_i32 = arith.constant 0 : i32
    return %arg0, %arg1 : i32, i32
  }
}

</mosaic_0001>

<bundles_post_ra>
// kernel: tpu_custom_call.1
= control target key start
LH: loop header
LB: loop body
LE: loop exit
PB: predicated region body
PF: predicated region fallthrough
CT: control target
= control target key end

     0   :  { %s906_s12 = smov 0   ;;  %s908_s13 = smov 0   ;;  %s1063_s0 = inlined_call_operand.vmem [shape: f32[128,16], index: 0, kind: input, shape index: {}]   ;;  %s1064_s1 = inlined_call_operand.vmem [shape: f32[128,64], index: 1, kind: input, shape index: {}]   ;;  %s1065_s2 = inlined_call_operand.vmem [shape: f32[16,32], index: 2, kind: input, shape index: {}]   ;;  %s1066_s3 = inlined_call_operand.vmem [shape: f32[256,32], index: 3, kind: output, shape index: {}]  }
   0x1   :  { %s910_s14 = smov 0  }
   0x2 LB: > { %s25_s15 = sadd.s32 1, %s880_s13  ;;  %p689_p0 = scmp.ge.s32.totalorder %s884_s14, 1  ;;  %s884_s14 = sphi %s910_s14, %s13_s14   ;;  %s880_s13 = sphi %s908_s13, %s1068_s13   ;;  %s876_s12 = sphi %s906_s12, %s1067_s12  }
   0x3   : > { %p27_p1 = scmp.ge.s32.totalorder %s25_s15, 2  ;;  %p161_p2 = scmp.lt.s32.totalorder %s884_s14, 3 }
   0x5   : > { %s1070_s15 = smov (%p27_p1, %s25_s15), 0  ;;  %p162_p3 = pnand %p689_p0, %p161_p2 }
   0x6   : > { %v235_v0 = vld [vmem:[%s1065_s2] sm:$0xff] (!%p162_p3)  ;;  %v236_v1 = vld [vmem:[%s1065_s2 + $0x8] sm:$0xff] (!%p162_p3)  ;;  %s690_s20 = sshll.u32 (!%p162_p3), %s876_s12, 3  ;;  %vm237_vm0 = vcmask (!%p162_p3), 130048   ;;  %v217_v11 = vld [vmem:[%s1064_s1 + $0x30] sm:$0xff] (!%p162_p3)  ;;  %vm384_vm1 = vcmask (!%p162_p3), 523264  }
   0x7   : > { %165 = sbr.rel (%p162_p3) target bundleno = 488 (0x1e8), region = 32  ;;  %v810_v2 = vpack.c.bf16 (!%p162_p3), %v236_v1, %v235_v0  ;;  %p193_p4 = scmp.lt.s32.totalorder (!%p162_p3), %s690_s20, 15  ;;  %795 = vmatprep.mubr.msk.f32.mxu1 (!%p162_p3), %vm384_vm1, %v217_v11  ;;  %v211_v12 = vld [vmem:[%s1064_s1] sm:$0xff] (!%p162_p3)  ;;  %vm367_vm2 = vcmask (!%p162_p3), 261120   ;;  %v218_v33 = vld [vmem:[%s1064_s1 + $0x38] sm:$0xff] (!%p162_p3)  ;;  %v212_v34 = vld [vmem:[%s1064_s1 + $0x8] sm:$0xff] (!%p162_p3) }
   0x8   : > { %v219_v35 = vld [vmem:[%s1064_s1 + $0x40] sm:$0xff] (!%p162_p3)  ;;  %v213_v36 = vld [vmem:[%s1064_s1 + $0x10] sm:$0xff] (!%p162_p3)  ;;  %v220_v37 = vld [vmem:[%s1064_s1 + $0x48] sm:$0xff] (!%p162_p3)  ;;  %s692_s7 = sshll.u32 (!%p162_p3), %s876_s12, 4 }
   0x9   : > { %811 = vmatprep.subr.bf16.mxu0 (!%p162_p3), %v810_v2  ;;  %v214_v38 = vld [vmem:[%s1064_s1 + $0x18] sm:$0xff] (!%p162_p3)  ;;  %v221_v39 = vld [vmem:[%s1064_s1 + $0x50] sm:$0xff] (!%p162_p3)  ;;  %v215_v40 = vld [vmem:[%s1064_s1 + $0x20] sm:$0xff] (!%p162_p3)  ;;  %p203_p5 = scmp.lt.s32.totalorder (!%p162_p3), %s692_s7, 31 }
   0xa   : > { %813 = vmatpush3.bf16.msra.mxu0 (!%p162_p3), %v810_v2  ;;  %v222_v41 = vld [vmem:[%s1064_s1 + $0x58] sm:$0xff] (!%p162_p3)  ;;  %v216_v42 = vld [vmem:[%s1064_s1 + $0x28] sm:$0xff] (!%p162_p3)  ;;  %v223_v43 = vld [vmem:[%s1064_s1 + $0x60] sm:$0xff] (!%p162_p3) }
   0xb   : > { %v224_v44 = vld [vmem:[%s1064_s1 + $0x68] sm:$0xff] (!%p162_p3)  ;;  %v225_v45 = vld [vmem:[%s1064_s1 + $0x70] sm:$0xff] (!%p162_p3)  ;;  %v226_v46 = vld [vmem:[%s1064_s1 + $0x78] sm:$0xff] (!%p162_p3) }
   0xe   : > { %s1072_s20 = smov (!%p193_p4, %s690_s20), 15  ;;  %s1074_s7 = smov (!%p203_p5, %s692_s7), 31 }
   0xf   : > { %s691_s21 = sshll.u32 %s1072_s20, 3  ;;  %s693_s8 = sshll.u32 %s1074_s7, 3 }
  0x10   : > { %s196_s24 = scalar_lea.vmem %s1063_s0, %s691_s21  ;;  %s1020_s11 = scalar_lea.vmem %s1066_s3, %s693_s8 }
  0x11   : > { %v227_v3 = vld [vmem:[%s196_s24] sm:$0xff]  ;;  %v228_v4 = vld [vmem:[%s196_s24 + $0x8] sm:$0xff]  ;;  %v229_v5 = vld [vmem:[%s196_s24 + $0x10] sm:$0xff] }
  0x12   : > { %758 = vmatprep.mubr.msk.f32.mxu0 %vm237_vm0, %v227_v3  ;;  %v230_v6 = vld [vmem:[%s196_s24 + $0x18] sm:$0xff]  ;;  %v231_v7 = vld [vmem:[%s196_s24 + $0x20] sm:$0xff]  ;;  %v232_v8 = vld [vmem:[%s196_s24 + $0x28] sm:$0xff] }
  0x13   : > { %759 = vmatmul.mubr.msk.f32.vlgmr.msra.gmra.mrb[0].mxu0 %vm237_vm0, %v228_v4  ;;  %v233_v9 = vld [vmem:[%s196_s24 + $0x30] sm:$0xff]  ;;  %v234_v10 = vld [vmem:[%s196_s24 + $0x38] sm:$0xff] }
  0x14   : > { %761 = vmatprep.mubr.msk.f32.mxu0 %vm237_vm0, %v229_v5 }
  0x17   : > { %762 = vmatmul.mubr.msk.f32.gmra.mrb[2].mxu0 %vm237_vm0, %v230_v6 }
  0x18   : > { %764 = vmatprep.mubr.msk.f32.mxu0 %vm237_vm0, %v231_v7 }
  0x1b   : > { %765 = vmatmul.mubr.msk.f32.gmra.mrb[4].mxu0 %vm237_vm0, %v232_v8 }
  0x1c   : > { %767 = vmatprep.mubr.msk.f32.mxu0 %vm237_vm0, %v233_v9 }
  0x1f   : > { %768 = vmatmul.mubr.msk.f32.gmra.mrb[6].mxu0 %vm237_vm0, %v234_v10 }
  0x20   : > { %786 = vmatprep.mubr.msk.f32.mxu0 %vm384_vm1, %v211_v12 }
  0xe6   : > { %v760_v13 = vpop.f32.mrb[0].mxu0 }
  0xe7   : > { %369 = vst.msk [vmem:[#allocation2 + $0x8] sm:$0xff] %vm367_vm2, %v760_v13  ;;  %v328_v14 = vpop.f32.mrb[1].mxu0 }
  0xe8   : > { %368 = vst.msk [vmem:[#allocation2] sm:$0xff] %vm367_vm2, %v328_v14 }
  0xea   : > { %v763_v15 = vpop.f32.mrb[2].mxu0 }
  0xeb   : > { %371 = vst.msk [vmem:[#allocation2 + $0x18] sm:$0xff] %vm367_vm2, %v763_v15  ;;  %v338_v16 = vpop.f32.mrb[3].mxu0 }
  0xec   : > { %370 = vst.msk [vmem:[#allocation2 + $0x10] sm:$0xff] %vm367_vm2, %v338_v16 }
  0xee   : > { %v766_v17 = vpop.f32.mrb[4].mxu0  ;;  %v377_v18 = vld [vmem:[#allocation2 + $0x8] sm:$0xff] }
  0xef   : > { %373 = vst.msk [vmem:[#allocation2 + $0x28] sm:$0xff] %vm367_vm2, %v766_v17  ;;  %v348_v19 = vpop.f32.mrb[5].mxu0  ;;  %v376_v20 = vld [vmem:[#allocation2] sm:$0xff] }
  0xf0   : > { %372 = vst.msk [vmem:[#allocation2 + $0x20] sm:$0xff] %vm367_vm2, %v348_v19  ;;  %v814_v21 = vpack.c.bf16 %v377_v18, %v376_v20 }
  0xf2   : > { %v769_v22 = vpop.f32.mrb[6].mxu0  ;;  %815 = vmatprep.subr.bf16.mxu0 %v814_v21  ;;  %830 = vmatprep.subr.bf16.mxu1 %v814_v21  ;;  %v379_v23 = vld [vmem:[#allocation2 + $0x18] sm:$0xff] }
  0xf3   : > { %375 = vst.msk [vmem:[#allocation2 + $0x38] sm:$0xff] %vm367_vm2, %v769_v22  ;;  %v358_v24 = vpop.f32.mrb[7].mxu0  ;;  %817 = vmatpush3.bf16.msra.mxu0 %v814_v21  ;;  %834 = vmatpush3.bf16.msra.mxu1 %v814_v21  ;;  %v378_v25 = vld [vmem:[#allocation2 + $0x10] sm:$0xff] }
  0xf4   : > { %374 = vst.msk [vmem:[#allocation2 + $0x30] sm:$0xff] %vm367_vm2, %v358_v24  ;;  %v818_v26 = vpack.c.bf16 %v379_v23, %v378_v25 }
  0xf6   : > { %819 = vmatprep.subr.bf16.mxu0 %v818_v26  ;;  %831 = vmatprep.subr.bf16.mxu1 %v818_v26  ;;  %v381_v27 = vld [vmem:[#allocation2 + $0x28] sm:$0xff] }
  0xf7   : > { %821 = vmatpush3.bf16.msra.mxu0 %v818_v26  ;;  %835 = vmatpush3.bf16.msra.mxu1 %v818_v26  ;;  %v380_v28 = vld [vmem:[#allocation2 + $0x20] sm:$0xff] }
  0xf8   : > { %v822_v29 = vpack.c.bf16 %v381_v27, %v380_v28 }
  0xfa   : > { %823 = vmatprep.subr.bf16.mxu0 %v822_v29  ;;  %832 = vmatprep.subr.bf16.mxu1 %v822_v29  ;;  %v383_v30 = vld [vmem:[#allocation2 + $0x38] sm:$0xff] }
  0xfb   : > { %825 = vmatpush3.bf16.msra.mxu0 %v822_v29  ;;  %836 = vmatpush3.bf16.msra.mxu1 %v822_v29  ;;  %v382_v31 = vld [vmem:[#allocation2 + $0x30] sm:$0xff] }
  0xfc   : > { %v826_v32 = vpack.c.bf16 %v383_v30, %v382_v31 }
  0xfe   : > { %827 = vmatprep.subr.bf16.mxu0 %v826_v32  ;;  %833 = vmatprep.subr.bf16.mxu1 %v826_v32 }
  0xff   : > { %829 = vmatpush3.bf16.msra.mxu0 %v826_v32  ;;  %837 = vmatpush3.bf16.msra.mxu1 %v826_v32 }
 0x102   : > { %796 = vmatmul.mubr.msk.f32.vlgmr.msra.gmra.mrb[0].mxu1 %vm384_vm1, %v218_v33  ;;  %787 = vmatmul.mubr.msk.f32.vlgmr.msra.gmra.mrb[8].mxu0 %vm384_vm1, %v212_v34 }
 0x103   : > { %798 = vmatprep.mubr.msk.f32.mxu1 %vm384_vm1, %v219_v35  ;;  %789 = vmatprep.mubr.msk.f32.mxu0 %vm384_vm1, %v213_v36 }
 0x106   : > { %799 = vmatmul.mubr.msk.f32.gmra.mrb[2].mxu1 %vm384_vm1, %v220_v37  ;;  %790 = vmatmul.mubr.msk.f32.gmra.mrb[10].mxu0 %vm384_vm1, %v214_v38 }
 0x107   : > { %801 = vmatprep.mubr.msk.f32.mxu1 %vm384_vm1, %v221_v39  ;;  %792 = vmatprep.mubr.msk.f32.mxu0 %vm384_vm1, %v215_v40 }
 0x10a   : > { %802 = vmatmul.mubr.msk.f32.gmra.mrb[4].mxu1 %vm384_vm1, %v222_v41  ;;  %793 = vmatmul.mubr.msk.f32.gmra.mrb[12].mxu0 %vm384_vm1, %v216_v42 }
 0x10b   : > { %804 = vmatprep.mubr.msk.f32.mxu1 %vm384_vm1, %v223_v43 }
 0x10e   : > { %805 = vmatmul.mubr.msk.f32.gmra.mrb[6].mxu1 %vm384_vm1, %v224_v44 }
 0x10f   : > { %807 = vmatprep.mubr.msk.f32.mxu1 %vm384_vm1, %v225_v45 }
 0x112   : > { %808 = vmatmul.mubr.msk.f32.gmra.mrb[8].mxu1 %vm384_vm1, %v226_v46 }
 0x1d5   : > { %v797_v47 = vpop.f32.mrb[0].mxu1  ;;  %v788_v48 = vpop.f32.mrb[8].mxu0 }
 0x1d6   : > { %585 = vst.msk [vmem:[%s1020_s11 + $0x38] sm:$0xff] %vm367_vm2, %v797_v47  ;;  %v529_v49 = vpop.f32.mrb[1].mxu1  ;;  %579 = vst.msk [vmem:[%s1020_s11 + $0x8] sm:$0xff] %vm367_vm2, %v788_v48  ;;  %v499_v50 = vpop.f32.mrb[9].mxu0 }
 0x1d7   : > { %584 = vst.msk [vmem:[%s1020_s11 + $0x30] sm:$0xff] %vm367_vm2, %v529_v49  ;;  %578 = vst.msk [vmem:[%s1020_s11] sm:$0xff] %vm367_vm2, %v499_v50 }
 0x1d9   : > { %v800_v51 = vpop.f32.mrb[2].mxu1  ;;  %v791_v52 = vpop.f32.mrb[10].mxu0 }
 0x1da   : > { %587 = vst.msk [vmem:[%s1020_s11 + $0x48] sm:$0xff] %vm367_vm2, %v800_v51  ;;  %v539_v53 = vpop.f32.mrb[3].mxu1  ;;  %581 = vst.msk [vmem:[%s1020_s11 + $0x18] sm:$0xff] %vm367_vm2, %v791_v52  ;;  %v509_v54 = vpop.f32.mrb[11].mxu0 }
 0x1db   : > { %586 = vst.msk [vmem:[%s1020_s11 + $0x40] sm:$0xff] %vm367_vm2, %v539_v53  ;;  %580 = vst.msk [vmem:[%s1020_s11 + $0x10] sm:$0xff] %vm367_vm2, %v509_v54 }
 0x1dd   : > { %v803_v55 = vpop.f32.mrb[4].mxu1  ;;  %v794_v56 = vpop.f32.mrb[12].mxu0 }
 0x1de   : > { %589 = vst.msk [vmem:[%s1020_s11 + $0x58] sm:$0xff] %vm367_vm2, %v803_v55  ;;  %v549_v57 = vpop.f32.mrb[5].mxu1  ;;  %583 = vst.msk [vmem:[%s1020_s11 + $0x28] sm:$0xff] %vm367_vm2, %v794_v56  ;;  %v519_v58 = vpop.f32.mrb[13].mxu0 }
 0x1df   : > { %588 = vst.msk [vmem:[%s1020_s11 + $0x50] sm:$0xff] %vm367_vm2, %v549_v57  ;;  %582 = vst.msk [vmem:[%s1020_s11 + $0x20] sm:$0xff] %vm367_vm2, %v519_v58 }
 0x1e1   : > { %v806_v59 = vpop.f32.mrb[6].mxu1 }
 0x1e2   : > { %591 = vst.msk [vmem:[%s1020_s11 + $0x68] sm:$0xff] %vm367_vm2, %v806_v59  ;;  %v559_v60 = vpop.f32.mrb[7].mxu1 }
 0x1e3   : > { %590 = vst.msk [vmem:[%s1020_s11 + $0x60] sm:$0xff] %vm367_vm2, %v559_v60 }
 0x1e5   : > { %v809_v61 = vpop.f32.mrb[8].mxu1 }
 0x1e6   : > { %593 = vst.msk [vmem:[%s1020_s11 + $0x78] sm:$0xff] %vm367_vm2, %v809_v61  ;;  %v569_v62 = vpop.f32.mrb[9].mxu1 }
 0x1e7   : > { %592 = vst.msk [vmem:[%s1020_s11 + $0x70] sm:$0xff] %vm367_vm2, %v569_v62 }
 0x1e8 PF: > { %s13_s14 = sadd.s32 1, %s884_s14   ;;  %s1067_s12 = smov %s880_s13 }
 0x1e9   : > { %p10_p6 = scmp.ge.s32.totalorder %s13_s14, 4   ;;  %s1068_s13 = smov %s1070_s15 }
 0x1eb   :  { %12 = sbr.rel (!%p10_p6) target bundleno = 2 (0x2), region = 65 }

</bundles_post_ra>
